<compile_context>
chip_gen: v5e
topology: v5e:2x2
jax: 0.10.0
libtpu: 0.0.40
codegen_flags: <defaults>
</compile_context>

<pallas_src>
import jax
import jax.numpy as jnp
from jax import lax
from jax.experimental import pallas as pl
from jax.experimental.pallas import tpu as pltpu


def _sigmoid(x):
    # Numerically stable sigmoid; tanh lowers to the EUP slot (free vs VPU/MXU).
    return 0.5 * (jnp.tanh(0.5 * x) + 1.0)


def _round_up(n, m):
    return ((n + m - 1) // m) * m


def _padded_tile_bytes(shape, itemsize=4):
    """Bytes of a VMEM tile after (8, 128) padding of the last two dims."""
    s = list(shape)
    s[-1] = _round_up(s[-1], 128)
    if len(s) >= 2:
        s[-2] = _round_up(s[-2], 8)
    n = 1
    for d in s:
        n *= int(d)
    return n * itemsize


def rnn_chunk_kernel(x_ref, wax_t_ref, b_in_ref, waa_t_ref, wya_t_ref, bya_ref,
                     y_ref, a_ref):
    """One time-chunk of the many-to-one recurrence.

    x_ref:     (T_CHUNK, B, I)  time-major input chunk (double-buffered stream)
    wax_t_ref: (I, H)           W_ax^T       (loop-invariant, fetched once)
    b_in_ref:  (1, H)           b_ax + b_aa  (folded recurrent bias)
    waa_t_ref: (H, H)           W_aa^T
    wya_t_ref: (H, O)           W_ya^T
    bya_ref:   (1, O)           b_ya
    y_ref:     (B, O)           output (written only on the last grid step)
    a_ref:     (B, H)           VMEM scratch: hidden state carried across steps
    """
    t_chunk = x_ref.shape[0]
    step = pl.program_id(0)
    last = pl.num_programs(0) - 1

    @pl.when(step == 0)
    def _init():
        a_ref[...] = jnp.zeros_like(a_ref)

    def body(t, a_prev):
        # Input projection fused into the kernel: no (T, B, H) HBM round trip.
        # Independent of a_prev, so it schedules off the serial critical path.
        u_t = jnp.dot(x_ref[t], wax_t_ref[...],
                      preferred_element_type=jnp.float32) + b_in_ref[...]
        pre = jnp.dot(a_prev, waa_t_ref[...],
                      preferred_element_type=jnp.float32) + u_t
        return _sigmoid(pre)

    # Bounded unroll: LLO scheduling visibility without vreg-pressure blow-up.
    a = lax.fori_loop(0, t_chunk, body, a_ref[...], unroll=min(t_chunk, 8))
    a_ref[...] = a

    @pl.when(step == last)
    def _finalize():
        pre_y = jnp.dot(a, wya_t_ref[...],
                        preferred_element_type=jnp.float32) + bya_ref[...]
        y_ref[...] = _sigmoid(pre_y).astype(y_ref.dtype)


def many_to_one_rnn(x, W_aa, b_aa, W_ax, b_ax, W_ya, b_ya, *, t_chunk=64):
    """x: (B, T, I) float32. Returns y: (B, O) float32 (last step's output)."""
    B, T, I = x.shape
    H = W_aa.shape[0]
    O = W_ya.shape[0]

    # Largest chunk <= t_chunk that divides T (a ragged tail chunk would run
    # garbage recurrence steps).
    # TODO(synk): support ragged T with a masked per-chunk trip count.
    tc = max(1, min(int(t_chunk), T))
    while T % tc:
        tc -= 1
    n_chunks = T // tc

    # One-time wrapper-side prep (cheap: O(T*B*I) + O(H^2); no (T,B,H) slab).
    x_tm = jnp.transpose(x, (1, 0, 2)).astype(jnp.float32)   # (T, B, I) time-major
    waa_t = jnp.transpose(W_aa).astype(jnp.float32)          # (H, H)
    wax_t = jnp.transpose(W_ax).astype(jnp.float32)          # (I, H)
    wya_t = jnp.transpose(W_ya).astype(jnp.float32)          # (H, O)
    b_in = (jnp.asarray(b_aa, jnp.float32)
            + jnp.asarray(b_ax, jnp.float32)).reshape(1, H)
    b_y = jnp.asarray(b_ya, jnp.float32).reshape(1, O)

    # Resident VMEM budget: double-buffered x chunk + weights/biases + output
    # (budgeted x2 for safety) + hidden-state scratch; cap below the v7x 64 MiB
    # physical ceiling, floor above the v5e 16 MiB scoped default's tiny cases.
    resident = (
        2 * _padded_tile_bytes((tc, B, I))
        + 2 * (_padded_tile_bytes((I, H)) + _padded_tile_bytes((1, H))
               + _padded_tile_bytes((H, H)) + _padded_tile_bytes((H, O))
               + _padded_tile_bytes((1, O)) + _padded_tile_bytes((B, O)))
        + _padded_tile_bytes((B, H))
    )
    vmem_limit = int(min(max(4 * resident, 8 * 1024 * 1024), 48 * 1024 * 1024))

    cost = pl.CostEstimate(
        flops=2 * T * B * H * (H + I) + 2 * B * H * O,
        transcendentals=T * B * H + B * O,
        bytes_accessed=4 * (T * B * I + I * H + H * H + H * O
                            + 2 * H + 2 * O + B * O),
    )

    loop_invariant_specs = [
        pl.BlockSpec((I, H), lambda i: (0, 0)),   # W_ax^T   (DMA'd once)
        pl.BlockSpec((1, H), lambda i: (0, 0)),   # b_ax + b_aa
        pl.BlockSpec((H, H), lambda i: (0, 0)),   # W_aa^T
        pl.BlockSpec((H, O), lambda i: (0, 0)),   # W_ya^T
        pl.BlockSpec((1, O), lambda i: (0, 0)),   # b_ya
    ]

    return pl.pallas_call(
        rnn_chunk_kernel,
        out_shape=jax.ShapeDtypeStruct((B, O), jnp.float32),
        grid=(n_chunks,),
        in_specs=[pl.BlockSpec((tc, B, I), lambda i: (i, 0, 0))]
                 + loop_invariant_specs,
        out_specs=pl.BlockSpec((B, O), lambda i: (0, 0)),
        scratch_shapes=[pltpu.VMEM((B, H), jnp.float32)],   # carried hidden state
        compiler_params=pltpu.CompilerParams(
            dimension_semantics=("arbitrary",),   # time axis is a serial carry
            vmem_limit_bytes=vmem_limit,
        ),
        cost_estimate=cost,
    )(x_tm, wax_t, b_in, waa_t, wya_t, b_y)


def _reference(x, W_aa, b_aa, W_ax, b_ax, W_ya, b_ya):
    B, T, I = x.shape
    H = W_aa.shape[0]
    a = jnp.zeros((B, H), jnp.float32)
    y = None
    for t in range(T):
        a = jax.nn.sigmoid(a @ W_aa.T + b_aa + x[:, t, :] @ W_ax.T + b_ax)
        y = jax.nn.sigmoid(a @ W_ya.T + b_ya)
    return y


if __name__ == "__main__":
    # Small shapes consistent with the module: x is (batch, input_times, input_size)
    B, T, I, H, O = 2, 8, 16, 32, 16

    key = jax.random.PRNGKey(0)
    k_x, k1, k2, k3, k4, k5, k6 = jax.random.split(key, 7)

    x = jax.random.normal(k_x, (B, T, I), dtype=jnp.float32)

    # Deterministic nn.Linear-style init: U(-1/sqrt(fan_in), 1/sqrt(fan_in))
    def lin_init(kw, kb, out_f, in_f):
        bound = 1.0 / jnp.sqrt(jnp.float32(in_f))
        W = jax.random.uniform(kw, (out_f, in_f), jnp.float32, -bound, bound)
        b = jax.random.uniform(kb, (1, out_f), jnp.float32, -bound, bound)
        return W, b

    W_aa, b_aa = lin_init(k1, k2, H, H)   # self.aa = nn.Linear(hidden, hidden)
    W_ax, b_ax = lin_init(k3, k4, H, I)   # self.ax = nn.Linear(input, hidden)
    W_ya, b_ya = lin_init(k5, k6, O, H)   # self.ya = nn.Linear(hidden, output)
    # Module's extra `bias` flag (ba/by) is False here; nn.Linear biases included.

    # t_chunk=4 -> grid=(2,): exercises the chunked/pipelined path with the
    # hidden state carried across grid steps in VMEM scratch.
    y = many_to_one_rnn(x, W_aa, b_aa, W_ax, b_ax, W_ya, b_ya, t_chunk=4)
    y = jax.block_until_ready(y)

    y_ref = _reference(x, W_aa, b_aa, W_ax, b_ax, W_ya, b_ya)
    assert y.shape == (B, O)
    assert jnp.allclose(y, y_ref, atol=1e-5, rtol=1e-5)

    print("KERNEL_OK")
</pallas_src>

<mosaic_0001>
module attributes {stable_mosaic.version = 11 : i64} {
  func.func @rnn_chunk_kernel(%arg0: i32, %arg1: memref<4x2x16xf32, #tpu.memory_space<vmem>>, %arg2: memref<16x32xf32, #tpu.memory_space<vmem>>, %arg3: memref<1x32xf32, #tpu.memory_space<vmem>>, %arg4: memref<32x32xf32, #tpu.memory_space<vmem>>, %arg5: memref<32x16xf32, #tpu.memory_space<vmem>>, %arg6: memref<1x16xf32, #tpu.memory_space<vmem>>, %arg7: memref<2x16xf32, #tpu.memory_space<vmem>>, %arg8: memref<2x32xf32, #tpu.memory_space<vmem>>) attributes {dimension_semantics = [#tpu.dimension_semantics<arbitrary>], iteration_bounds = array<i64: 2>, scalar_prefetch = 0 : i64, scratch_operands = 1 : i64, tpu.core_type = #tpu.core_type<tc>, window_params = [{transform_indices = @transform_0, window_bounds = array<i64: 4, 2, 16>}, {pipeline_mode = #tpu.pipeline_mode<synchronous>, transform_indices = @transform_1, window_bounds = array<i64: 16, 32>}, {pipeline_mode = #tpu.pipeline_mode<synchronous>, transform_indices = @transform_2, window_bounds = array<i64: 1, 32>}, {pipeline_mode = #tpu.pipeline_mode<synchronous>, transform_indices = @transform_3, window_bounds = array<i64: 32, 32>}, {pipeline_mode = #tpu.pipeline_mode<synchronous>, transform_indices = @transform_4, window_bounds = array<i64: 32, 16>}, {pipeline_mode = #tpu.pipeline_mode<synchronous>, transform_indices = @transform_5, window_bounds = array<i64: 1, 16>}, {pipeline_mode = #tpu.pipeline_mode<synchronous>, transform_indices = @transform_6, window_bounds = array<i64: 2, 16>}]} {
    %c0_i32 = arith.constant 0 : i32
    %0 = arith.cmpi eq, %arg0, %c0_i32 : i32
    %1 = arith.extui %0 : i1 to i32
    %c0_i32_0 = arith.constant 0 : i32
    %2 = arith.cmpi ne, %1, %c0_i32_0 : i32
    scf.if %2 {
      %cst_58 = arith.constant 0.000000e+00 : f32
      %80 = vector.broadcast %cst_58 : f32 to vector<2x32xf32>
      %c0_59 = arith.constant 0 : index
      %c0_60 = arith.constant 0 : index
      %81 = vector.load %arg8[%c0_59, %c0_60] : memref<2x32xf32, #tpu.memory_space<vmem>>, vector<2x32xf32>
      tpu.vector_store %arg8[%c0_59, %c0_60], %80 {strides = array<i32>} : memref<2x32xf32, #tpu.memory_space<vmem>>, vector<2x32xf32>,
    } else {
    }
    %c0 = arith.constant 0 : index
    %c0_1 = arith.constant 0 : index
    %3 = vector.load %arg8[%c0, %c0_1] : memref<2x32xf32, #tpu.memory_space<vmem>>, vector<2x32xf32>
    %c0_i32_2 = arith.constant 0 : i32
    %4 = arith.index_cast %c0_i32_2 : i32 to index
    %c0_3 = arith.constant 0 : index
    %c0_4 = arith.constant 0 : index
    %5 = vector.load %arg1[%4, %c0_3, %c0_4] : memref<4x2x16xf32, #tpu.memory_space<vmem>>, vector<1x2x16xf32>
    %6 = vector.shape_cast %5 : vector<1x2x16xf32> to vector<2x16xf32>
    %c0_5 = arith.constant 0 : index
    %c0_6 = arith.constant 0 : index
    %7 = vector.load %arg2[%c0_5, %c0_6] : memref<16x32xf32, #tpu.memory_space<vmem>>, vector<16x32xf32>
    %cst = arith.constant dense<0.000000e+00> : vector<2x32xf32>
    %8 = tpu.matmul %6, %7, %cst {dimension_numbers = #tpu.dot_dimension_numbers<[1], [0], [0], [1], [0, 0, 1, 1], [], []>} : vector<2x16xf32>, vector<16x32xf32>, vector<2x32xf32> -> vector<2x32xf32>
    %c0_7 = arith.constant 0 : index
    %c0_8 = arith.constant 0 : index
    %9 = vector.load %arg3[%c0_7, %c0_8] : memref<1x32xf32, #tpu.memory_space<vmem>>, vector<1x32xf32>
    %10 = vector.broadcast %9 : vector<1x32xf32> to vector<2x32xf32>
    %11 = arith.addf %8, %10 : vector<2x32xf32>
    %c0_9 = arith.constant 0 : index
    %c0_10 = arith.constant 0 : index
    %12 = vector.load %arg4[%c0_9, %c0_10] : memref<32x32xf32, #tpu.memory_space<vmem>>, vector<32x32xf32>
    %cst_11 = arith.constant dense<0.000000e+00> : vector<2x32xf32>
    %13 = tpu.matmul %3, %12, %cst_11 {dimension_numbers = #tpu.dot_dimension_numbers<[1], [0], [0], [1], [0, 0, 1, 1], [], []>} : vector<2x32xf32>, vector<32x32xf32>, vector<2x32xf32> -> vector<2x32xf32>
    %14 = arith.addf %13, %11 : vector<2x32xf32>
    %cst_12 = arith.constant 5.000000e-01 : f32
    %15 = vector.broadcast %cst_12 : f32 to vector<2x32xf32>
    %16 = arith.mulf %15, %14 : vector<2x32xf32>
    %17 = math.tanh %16 : vector<2x32xf32>
    %cst_13 = arith.constant 1.000000e+00 : f32
    %18 = vector.broadcast %cst_13 : f32 to vector<2x32xf32>
    %19 = arith.addf %17, %18 : vector<2x32xf32>
    %cst_14 = arith.constant 5.000000e-01 : f32
    %20 = vector.broadcast %cst_14 : f32 to vector<2x32xf32>
    %21 = arith.mulf %20, %19 : vector<2x32xf32>
    %c1_i32 = arith.constant 1 : i32
    %22 = arith.index_cast %c1_i32 : i32 to index
    %c0_15 = arith.constant 0 : index
    %c0_16 = arith.constant 0 : index
    %23 = vector.load %arg1[%22, %c0_15, %c0_16] : memref<4x2x16xf32, #tpu.memory_space<vmem>>, vector<1x2x16xf32>
    %24 = vector.shape_cast %23 : vector<1x2x16xf32> to vector<2x16xf32>
    %c0_17 = arith.constant 0 : index
    %c0_18 = arith.constant 0 : index
    %25 = vector.load %arg2[%c0_17, %c0_18] : memref<16x32xf32, #tpu.memory_space<vmem>>, vector<16x32xf32>
    %cst_19 = arith.constant dense<0.000000e+00> : vector<2x32xf32>
    %26 = tpu.matmul %24, %25, %cst_19 {dimension_numbers = #tpu.dot_dimension_numbers<[1], [0], [0], [1], [0, 0, 1, 1], [], []>} : vector<2x16xf32>, vector<16x32xf32>, vector<2x32xf32> -> vector<2x32xf32>
    %c0_20 = arith.constant 0 : index
    %c0_21 = arith.constant 0 : index
    %27 = vector.load %arg3[%c0_20, %c0_21] : memref<1x32xf32, #tpu.memory_space<vmem>>, vector<1x32xf32>
    %28 = vector.broadcast %27 : vector<1x32xf32> to vector<2x32xf32>
    %29 = arith.addf %26, %28 : vector<2x32xf32>
    %c0_22 = arith.constant 0 : index
    %c0_23 = arith.constant 0 : index
    %30 = vector.load %arg4[%c0_22, %c0_23] : memref<32x32xf32, #tpu.memory_space<vmem>>, vector<32x32xf32>
    %cst_24 = arith.constant dense<0.000000e+00> : vector<2x32xf32>
    %31 = tpu.matmul %21, %30, %cst_24 {dimension_numbers = #tpu.dot_dimension_numbers<[1], [0], [0], [1], [0, 0, 1, 1], [], []>} : vector<2x32xf32>, vector<32x32xf32>, vector<2x32xf32> -> vector<2x32xf32>
    %32 = arith.addf %31, %29 : vector<2x32xf32>
    %cst_25 = arith.constant 5.000000e-01 : f32
    %33 = vector.broadcast %cst_25 : f32 to vector<2x32xf32>
    %34 = arith.mulf %33, %32 : vector<2x32xf32>
    %35 = math.tanh %34 : vector<2x32xf32>
    %cst_26 = arith.constant 1.000000e+00 : f32
    %36 = vector.broadcast %cst_26 : f32 to vector<2x32xf32>
    %37 = arith.addf %35, %36 : vector<2x32xf32>
    %cst_27 = arith.constant 5.000000e-01 : f32
    %38 = vector.broadcast %cst_27 : f32 to vector<2x32xf32>
    %39 = arith.mulf %38, %37 : vector<2x32xf32>
    %c2_i32 = arith.constant 2 : i32
    %40 = arith.index_cast %c2_i32 : i32 to index
    %c0_28 = arith.constant 0 : index
    %c0_29 = arith.constant 0 : index
    %41 = vector.load %arg1[%40, %c0_28, %c0_29] : memref<4x2x16xf32, #tpu.memory_space<vmem>>, vector<1x2x16xf32>
    %42 = vector.shape_cast %41 : vector<1x2x16xf32> to vector<2x16xf32>
    %c0_30 = arith.constant 0 : index
    %c0_31 = arith.constant 0 : index
    %43 = vector.load %arg2[%c0_30, %c0_31] : memref<16x32xf32, #tpu.memory_space<vmem>>, vector<16x32xf32>
    %cst_32 = arith.constant dense<0.000000e+00> : vector<2x32xf32>
    %44 = tpu.matmul %42, %43, %cst_32 {dimension_numbers = #tpu.dot_dimension_numbers<[1], [0], [0], [1], [0, 0, 1, 1], [], []>} : vector<2x16xf32>, vector<16x32xf32>, vector<2x32xf32> -> vector<2x32xf32>
    %c0_33 = arith.constant 0 : index
    %c0_34 = arith.constant 0 : index
    %45 = vector.load %arg3[%c0_33, %c0_34] : memref<1x32xf32, #tpu.memory_space<vmem>>, vector<1x32xf32>
    %46 = vector.broadcast %45 : vector<1x32xf32> to vector<2x32xf32>
    %47 = arith.addf %44, %46 : vector<2x32xf32>
    %c0_35 = arith.constant 0 : index
    %c0_36 = arith.constant 0 : index
    %48 = vector.load %arg4[%c0_35, %c0_36] : memref<32x32xf32, #tpu.memory_space<vmem>>, vector<32x32xf32>
    %cst_37 = arith.constant dense<0.000000e+00> : vector<2x32xf32>
    %49 = tpu.matmul %39, %48, %cst_37 {dimension_numbers = #tpu.dot_dimension_numbers<[1], [0], [0], [1], [0, 0, 1, 1], [], []>} : vector<2x32xf32>, vector<32x32xf32>, vector<2x32xf32> -> vector<2x32xf32>
    %50 = arith.addf %49, %47 : vector<2x32xf32>
    %cst_38 = arith.constant 5.000000e-01 : f32
    %51 = vector.broadcast %cst_38 : f32 to vector<2x32xf32>
    %52 = arith.mulf %51, %50 : vector<2x32xf32>
    %53 = math.tanh %52 : vector<2x32xf32>
    %cst_39 = arith.constant 1.000000e+00 : f32
    %54 = vector.broadcast %cst_39 : f32 to vector<2x32xf32>
    %55 = arith.addf %53, %54 : vector<2x32xf32>
    %cst_40 = arith.constant 5.000000e-01 : f32
    %56 = vector.broadcast %cst_40 : f32 to vector<2x32xf32>
    %57 = arith.mulf %56, %55 : vector<2x32xf32>
    %c3_i32 = arith.constant 3 : i32
    %58 = arith.index_cast %c3_i32 : i32 to index
    %c0_41 = arith.constant 0 : index
    %c0_42 = arith.constant 0 : index
    %59 = vector.load %arg1[%58, %c0_41, %c0_42] : memref<4x2x16xf32, #tpu.memory_space<vmem>>, vector<1x2x16xf32>
    %60 = vector.shape_cast %59 : vector<1x2x16xf32> to vector<2x16xf32>
    %c0_43 = arith.constant 0 : index
    %c0_44 = arith.constant 0 : index
    %61 = vector.load %arg2[%c0_43, %c0_44] : memref<16x32xf32, #tpu.memory_space<vmem>>, vector<16x32xf32>
    %cst_45 = arith.constant dense<0.000000e+00> : vector<2x32xf32>
    %62 = tpu.matmul %60, %61, %cst_45 {dimension_numbers = #tpu.dot_dimension_numbers<[1], [0], [0], [1], [0, 0, 1, 1], [], []>} : vector<2x16xf32>, vector<16x32xf32>, vector<2x32xf32> -> vector<2x32xf32>
    %c0_46 = arith.constant 0 : index
    %c0_47 = arith.constant 0 : index
    %63 = vector.load %arg3[%c0_46, %c0_47] : memref<1x32xf32, #tpu.memory_space<vmem>>, vector<1x32xf32>
    %64 = vector.broadcast %63 : vector<1x32xf32> to vector<2x32xf32>
    %65 = arith.addf %62, %64 : vector<2x32xf32>
    %c0_48 = arith.constant 0 : index
    %c0_49 = arith.constant 0 : index
    %66 = vector.load %arg4[%c0_48, %c0_49] : memref<32x32xf32, #tpu.memory_space<vmem>>, vector<32x32xf32>
    %cst_50 = arith.constant dense<0.000000e+00> : vector<2x32xf32>
    %67 = tpu.matmul %57, %66, %cst_50 {dimension_numbers = #tpu.dot_dimension_numbers<[1], [0], [0], [1], [0, 0, 1, 1], [], []>} : vector<2x32xf32>, vector<32x32xf32>, vector<2x32xf32> -> vector<2x32xf32>
    %68 = arith.addf %67, %65 : vector<2x32xf32>
    %cst_51 = arith.constant 5.000000e-01 : f32
    %69 = vector.broadcast %cst_51 : f32 to vector<2x32xf32>
    %70 = arith.mulf %69, %68 : vector<2x32xf32>
    %71 = math.tanh %70 : vector<2x32xf32>
    %cst_52 = arith.constant 1.000000e+00 : f32
    %72 = vector.broadcast %cst_52 : f32 to vector<2x32xf32>
    %73 = arith.addf %71, %72 : vector<2x32xf32>
    %cst_53 = arith.constant 5.000000e-01 : f32
    %74 = vector.broadcast %cst_53 : f32 to vector<2x32xf32>
    %75 = arith.mulf %74, %73 : vector<2x32xf32>
    %c4_i32 = arith.constant 4 : i32
    %c0_54 = arith.constant 0 : index
    %c0_55 = arith.constant 0 : index
    %76 = vector.load %arg8[%c0_54, %c0_55] : memref<2x32xf32, #tpu.memory_space<vmem>>, vector<2x32xf32>
    tpu.vector_store %arg8[%c0_54, %c0_55], %75 {strides = array<i32>} : memref<2x32xf32, #tpu.memory_space<vmem>>, vector<2x32xf32>,
    %c1_i32_56 = arith.constant 1 : i32
    %77 = arith.cmpi eq, %arg0, %c1_i32_56 : i32
    %78 = arith.extui %77 : i1 to i32
    %c0_i32_57 = arith.constant 0 : i32
    %79 = arith.cmpi ne, %78, %c0_i32_57 : i32
    scf.if %79 {
      %c0_58 = arith.constant 0 : index
      %c0_59 = arith.constant 0 : index
      %80 = vector.load %arg5[%c0_58, %c0_59] : memref<32x16xf32, #tpu.memory_space<vmem>>, vector<32x16xf32>
      %cst_60 = arith.constant dense<0.000000e+00> : vector<2x16xf32>
      %81 = tpu.matmul %75, %80, %cst_60 {dimension_numbers = #tpu.dot_dimension_numbers<[1], [0], [0], [1], [0, 0, 1, 1], [], []>} : vector<2x32xf32>, vector<32x16xf32>, vector<2x16xf32> -> vector<2x16xf32>
      %c0_61 = arith.constant 0 : index
      %c0_62 = arith.constant 0 : index
      %82 = vector.load %arg6[%c0_61, %c0_62] : memref<1x16xf32, #tpu.memory_space<vmem>>, vector<1x16xf32>
      %83 = vector.broadcast %82 : vector<1x16xf32> to vector<2x16xf32>
      %84 = arith.addf %81, %83 : vector<2x16xf32>
      %cst_63 = arith.constant 5.000000e-01 : f32
      %85 = vector.broadcast %cst_63 : f32 to vector<2x16xf32>
      %86 = arith.mulf %85, %84 : vector<2x16xf32>
      %87 = math.tanh %86 : vector<2x16xf32>
      %cst_64 = arith.constant 1.000000e+00 : f32
      %88 = vector.broadcast %cst_64 : f32 to vector<2x16xf32>
      %89 = arith.addf %87, %88 : vector<2x16xf32>
      %cst_65 = arith.constant 5.000000e-01 : f32
      %90 = vector.broadcast %cst_65 : f32 to vector<2x16xf32>
      %91 = arith.mulf %90, %89 : vector<2x16xf32>
      %c0_66 = arith.constant 0 : index
      %c0_67 = arith.constant 0 : index
      %92 = vector.load %arg7[%c0_66, %c0_67] : memref<2x16xf32, #tpu.memory_space<vmem>>, vector<2x16xf32>
      tpu.vector_store %arg7[%c0_66, %c0_67], %91 {strides = array<i32>} : memref<2x16xf32, #tpu.memory_space<vmem>>, vector<2x16xf32>,
    } else {
    }
    return
  }
  func.func @transform_0(%arg0: i32) -> (i32, i32, i32) {
    %c0_i32 = arith.constant 0 : i32
    %c0_i32_0 = arith.constant 0 : i32
    %c0_i32_1 = arith.constant 0 : i32
    return %arg0, %c0_i32, %c0_i32_0 : i32, i32, i32
  }
  func.func @transform_1(%arg0: i32) -> (i32, i32) {
    %c0_i32 = arith.constant 0 : i32
    %c0_i32_0 = arith.constant 0 : i32
    %c0_i32_1 = arith.constant 0 : i32
    return %c0_i32, %c0_i32_0 : i32, i32
  }
  func.func @transform_2(%arg0: i32) -> (i32, i32) {
    %c0_i32 = arith.constant 0 : i32
    %c0_i32_0 = arith.constant 0 : i32
    %c0_i32_1 = arith.constant 0 : i32
    return %c0_i32, %c0_i32_0 : i32, i32
  }
  func.func @transform_3(%arg0: i32) -> (i32, i32) {
    %c0_i32 = arith.constant 0 : i32
    %c0_i32_0 = arith.constant 0 : i32
    %c0_i32_1 = arith.constant 0 : i32
    return %c0_i32, %c0_i32_0 : i32, i32
  }
  func.func @transform_4(%arg0: i32) -> (i32, i32) {
    %c0_i32 = arith.constant 0 : i32
    %c0_i32_0 = arith.constant 0 : i32
    %c0_i32_1 = arith.constant 0 : i32
    return %c0_i32, %c0_i32_0 : i32, i32
  }
  func.func @transform_5(%arg0: i32) -> (i32, i32) {
    %c0_i32 = arith.constant 0 : i32
    %c0_i32_0 = arith.constant 0 : i32
    %c0_i32_1 = arith.constant 0 : i32
    return %c0_i32, %c0_i32_0 : i32, i32
  }
  func.func @transform_6(%arg0: i32) -> (i32, i32) {
    %c0_i32 = arith.constant 0 : i32
    %c0_i32_0 = arith.constant 0 : i32
    %c0_i32_1 = arith.constant 0 : i32
    return %c0_i32, %c0_i32_0 : i32, i32
  }
}

</mosaic_0001>

<bundles_post_ra>
// kernel: tpu_custom_call.1
= control target key start
LH: loop header
LB: loop body
LE: loop exit
PB: predicated region body
PF: predicated region fallthrough
CT: control target
= control target key end

     0   :  { %11 = vsyncpa [#allocation4], 0  ;;  %s841_s0 = inlined_call_operand.vmem [shape: f32[8,2,16], index: 0, kind: input, shape index: {}]   ;;  %s842_s1 = inlined_call_operand.hbm [shape: f32[16,32], index: 1, kind: input, shape index: {}]   ;;  %s843_s2 = inlined_call_operand.vmem [shape: f32[1,32], index: 2, kind: input, shape index: {}]   ;;  %s844_s3 = inlined_call_operand.vmem [shape: f32[32,32], index: 3, kind: input, shape index: {}]   ;;  %s845_s4 = inlined_call_operand.vmem [shape: f32[32,16], index: 4, kind: input, shape index: {}]   ;;  %s846_s5 = inlined_call_operand.vmem [shape: f32[1,16], index: 5, kind: input, shape index: {}]   ;;  %s847_s6 = inlined_call_operand.hbm [shape: f32[2,16], index: 6, kind: output, shape index: {}]  }
   0x1   :  { %12 = vsyncpa [#allocation5], 0  ;;  %s767_s21 = smov 0  }
   0x2 LB: > { %s186_s24 = sshll.u32 %s842_s1, 4  ;;  %s776_s25 = sadd.s32 4294967295, %s725_s21   ;;  %s725_s21 = sphi %s767_s21, %s18_s21   ;;  %s187_s24 = int_to_ptr.hbm [resolvable:$true] %s186_s24 }
   0x3   : > { %p587_p0 = scmp.ge.s32.totalorder %s725_s21, 1  ;;  %p175_p1 = scmp.lt.s32.totalorder %s725_s21, 3 }
   0x4   : > { %p588_p2 = scmp.ne.s32.totalorder %s776_s25, 0  ;;  %p624_p3 = scmp.eq.s32.totalorder %s776_s25, 0 }
   0x5   : > { %p176_p4 = pnand %p587_p0, %p175_p1  ;;  %s727_s26 = smov [#allocation3]  }
   0x6   : > { %s188_s27 = sshll.u32 %s727_s26, 4  ;;  %s728_s28 = smov 128   ;;  %s189_s27 = int_to_ptr.vmem [resolvable:$true] %s188_s27 }
   0x7   : > { %p620_p5 = pneg %p176_p4  ;;  %s729_s29 = smov 8  }
   0x8   : > { %225 = sbr.rel (%p176_p4) target bundleno = 768 (0x300), region = 44 }
   0x9   : > { %p621_p6 = pnand %p624_p3, %p620_p5 }
   0xb   : > { %623 = dma.hbm_to_vmem [thread:$0]  (!%p621_p6), %s187_s24, 256, %s189_s27, [#allocation4], %s728_s28, %s728_s28, %s729_s29  }
   0xd   : > { %716 = dma.done.wait (%p624_p3), [#allocation4], 256  }
   0xe   : > { %718 = vsyncadd (%p624_p3), [#allocation4], 4294967040  ;;  %s592_s30 = sshll.u32 %s776_s25, 2 }
   0xf   : > { %p252_p7 = scmp.lt.s32.totalorder %s592_s30, 7  ;;  %260 = sbr.rel (%p588_p2) target bundleno = 22 (0x16), region = 52 }
  0x11   : > { %s849_s30 = smov (!%p252_p7, %s592_s30), 7 }
  0x12   : > { %s593_s7 = sshll.u32 %s849_s30, 1 }
  0x13   : > { %s786_s10 = scalar_lea.vmem %s841_s0, %s593_s7 }
  0x14   : > { %vm261_vm0 = vcmask 254976   ;;  %v730_v0 = vmov 0.0  }
  0x15   : > { %262 = vst.msk [vmem:[#allocation2] sm:$0x3] %vm261_vm0, %v730_v0 }
  0x16 PF: > { %v298_v1 = vld [vmem:[%s844_s3 + $0x18] sm:$0xff]  ;;  %v266_v2 = vld [vmem:[#allocation3 + $0x8] sm:$0xff]  ;;  %v265_v4 = vld [vmem:[#allocation3] sm:$0xff]  ;;  %vm271_vm1 = vcmask 130048   ;;  %vm299_vm2 = vcmask 261120   ;;  %vm483_vm3 = vcmask 254976  }
  0x17   : > { %v297_v3 = vld [vmem:[%s844_s3 + $0x10] sm:$0xff]  ;;  %315 = vmatpush.msra.mxu1 %v298_v1  ;;  %289 = vmatpush.msra.mxu0 %v266_v2  ;;  %v264_v5 = vld [vmem:[%s786_s10] sm:$0x3]  ;;  %v296_v6 = vld [vmem:[%s844_s3 + $0x8] sm:$0xff]  ;;  %p606_p8 = scmp.ne.s32.totalorder %s776_s25, 1 }
  0x18   : > { %367 = vmatpush.msra.mxu3 %v298_v1  ;;  %346 = vmatpush.msra.mxu2 %v266_v2  ;;  %v295_v7 = vld [vmem:[%s844_s3] sm:$0xff] }
  0x19   : > { %316 = vmatpush.msra.mxu1 %v297_v3  ;;  %290 = vmatpush.msra.mxu0 %v265_v4  ;;  %v597_v9 = vld [vmem:[%s786_s10 + $0x2] sm:$0x3]  ;;  %v641_v10 = vld [vmem:[%s843_s2] ss:$0 sm:$0xff]  ;;  %v600_v19 = vld [vmem:[%s786_s10 + $0x4] sm:$0x3] }
  0x1a   : > { %595 = vmatmul.msk.f32.vlgmr.msra.gmra.mxu0 %vm271_vm1, %v264_v5  ;;  %368 = vmatpush.msra.mxu3 %v297_v3  ;;  %v603_v28 = vld [vmem:[%s786_s10 + $0x6] sm:$0x3] }
  0x1b   : > { %317 = vmatpush.msra.mxu1 %v296_v6  ;;  %347 = vmatpush.msra.mxu2 %v265_v4 }
  0x1c   : > { %v263_v8 = vld [vmem:[#allocation2] sm:$0x3]  ;;  %369 = vmatpush.msra.mxu3 %v296_v6  ;;  %398 = vmatpush.msrb.mxu0 %v266_v2 }
  0x1d   : > { %419 = vmatpush.msrb.mxu2 %v298_v1  ;;  %318 = vmatpush.msra.mxu1 %v295_v7 }
  0x1e   : > { %596 = vmatmul.msk.f32.vlgmr.msra.gmra.mxu1 %vm299_vm2, %v263_v8  ;;  %370 = vmatpush.msra.mxu3 %v295_v7 }
  0x1f   : > { %420 = vmatpush.msrb.mxu2 %v297_v3  ;;  %399 = vmatpush.msrb.mxu0 %v265_v4 }
  0x20   : > { %471 = vmatpush.msrb.mxu3 %v298_v1  ;;  %450 = vmatpush.msrb.mxu1 %v266_v2 }
  0x21   : > { %421 = vmatpush.msrb.mxu2 %v296_v6 }
  0x22   : > { %472 = vmatpush.msrb.mxu3 %v297_v3  ;;  %451 = vmatpush.msrb.mxu1 %v265_v4 }
  0x23   : > { %422 = vmatpush.msrb.mxu2 %v295_v7  ;;  %601 = vmatmul.msk.f32.vlgmr.msrb.gmra.mxu0 %vm271_vm1, %v600_v19 }
  0x24   : > { %473 = vmatpush.msrb.mxu3 %v296_v6  ;;  %598 = vmatmul.msk.f32.vlgmr.msra.gmra.mxu2 %vm271_vm1, %v597_v9 }
  0x26   : > { %474 = vmatpush.msrb.mxu3 %v295_v7  ;;  %604 = vmatmul.msk.f32.vlgmr.msrb.gmra.mxu1 %vm271_vm1, %v603_v28 }
  0x97   : > { %v292_v11 = vpop.f32.mrf.mxu0 }
  0x98   : > { %v293_v12 = vadd.f32 %v641_v10, %v292_v11 }
  0x9b   : > { %v320_v13 = vpop.f32.mrf.mxu1 }
  0x9c   : > { %v321_v14 = vadd.f32 %v320_v13, %v293_v12 }
  0x9e   : > { %v323_v15 = vmul.f32 0.5, %v321_v14 }
  0xa0   : > { %642 = vtanh.f32 %v323_v15  ;;  %v401_v29 = vpop.f32.mrf.mxu0 }
  0xa1   : > { %v402_v30 = vadd.f32 %v641_v10, %v401_v29 }
  0xa3   : > { %v453_v37 = vpop.f32.mrf.mxu1 }
  0xa4   : > { %v454_v38 = vadd.f32 %v641_v10, %v453_v37 }
  0xa6   : > { %v643_v16 = vpop.eup %642 }
  0xa7   : > { %v325_v17 = vadd.f32 1.0, %v643_v16  ;;  %v349_v20 = vpop.f32.mrf.mxu2 }
  0xa8   : > { %v350_v21 = vadd.f32 %v641_v10, %v349_v20 }
  0xa9   : > { %v326_v18 = vmul.f32 0.5, %v325_v17 }
  0xab   : > { %599 = vmatmul.msk.f32.vlgmr.msra.gmra.mxu3 %vm299_vm2, %v326_v18 }
 0x12e   : > { %v372_v22 = vpop.f32.mrf.mxu3 }
 0x12f   : > { %v373_v23 = vadd.f32 %v372_v22, %v350_v21 }
 0x131   : > { %v375_v24 = vmul.f32 0.5, %v373_v23 }
 0x133   : > { %644 = vtanh.f32 %v375_v24 }
 0x139   : > { %v645_v25 = vpop.eup %644 }
 0x13a   : > { %v377_v26 = vadd.f32 1.0, %v645_v25 }
 0x13c   : > { %v378_v27 = vmul.f32 0.5, %v377_v26 }
 0x13e   : > { %602 = vmatmul.msk.f32.vlgmr.msrb.gmra.mxu2 %vm299_vm2, %v378_v27 }
 0x1c1   : > { %v424_v31 = vpop.f32.mrf.mxu2 }
 0x1c2   : > { %v425_v32 = vadd.f32 %v424_v31, %v402_v30 }
 0x1c4   : > { %v427_v33 = vmul.f32 0.5, %v425_v32 }
 0x1c6   : > { %646 = vtanh.f32 %v427_v33 }
 0x1cc   : > { %v647_v34 = vpop.eup %646 }
 0x1cd   : > { %v429_v35 = vadd.f32 1.0, %v647_v34 }
 0x1cf   : > { %v430_v36 = vmul.f32 0.5, %v429_v35 }
 0x1d1   : > { %605 = vmatmul.msk.f32.vlgmr.msrb.gmra.mxu3 %vm299_vm2, %v430_v36 }
 0x254   : > { %v476_v39 = vpop.f32.mrf.mxu3 }
 0x255   : > { %v477_v40 = vadd.f32 %v476_v39, %v454_v38 }
 0x257   : > { %v479_v41 = vmul.f32 0.5, %v477_v40 }
 0x259   : > { %648 = vtanh.f32 %v479_v41 }
 0x25f   : > { %v649_v42 = vpop.eup %648 }
 0x260   : > { %v481_v43 = vadd.f32 1.0, %v649_v42  ;;  %488 = sbr.rel (%p606_p8) target bundleno = 763 (0x2fb), region = 56 }
 0x262   : > { %v482_v44 = vmul.f32 0.5, %v481_v43 }
 0x264   : > { %484 = vst.msk [vmem:[#allocation2] sm:$0x3] %vm483_vm3, %v482_v44 }
 0x265   : > { %v492_v45 = vld [vmem:[%s845_s4 + $0x18] sm:$0xff]  ;;  %v491_v46 = vld [vmem:[%s845_s4 + $0x10] sm:$0xff]  ;;  %v490_v47 = vld [vmem:[%s845_s4 + $0x8] sm:$0xff]  ;;  %vm524_vm4 = vcmask 123904  }
 0x266   : > { %512 = vmatpush.msra.mxu0 %v492_v45  ;;  %v489_v48 = vld [vmem:[%s845_s4] sm:$0xff] }
 0x267   : > { %v650_v49 = vld [vmem:[%s846_s5] ss:$0 sm:$0xff] }
 0x268   : > { %513 = vmatpush.msra.mxu0 %v491_v46 }
 0x26a   : > { %514 = vmatpush.msra.mxu0 %v490_v47 }
 0x26c   : > { %515 = vmatpush.msra.mxu0 %v489_v48 }
 0x26d   : > { %607 = vmatmul.msk.f32.vlgmr.msra.gmra.mxu0 %vm299_vm2, %v482_v44 }
 0x2ea   : > { %v517_v50 = vpop.f32.mrf.mxu0 }
 0x2eb   : > { %v518_v51 = vadd.f32 %v650_v49, %v517_v50 }
 0x2ed   : > { %v520_v52 = vmul.f32 0.5, %v518_v51 }
 0x2ef   : > { %651 = vtanh.f32 %v520_v52 }
 0x2f5   : > { %v652_v53 = vpop.eup %651 }
 0x2f6   : > { %v522_v54 = vadd.f32 1.0, %v652_v53 }
 0x2f8   : > { %v523_v55 = vmul.f32 0.5, %v522_v54 }
 0x2fa   : > { %525 = vst.msk [vmem:[#allocation6] sm:$0x3] %vm524_vm4, %v523_v55 }
 0x2fb PF: > { %p626_p9 = scmp.eq.s32.totalorder %s776_s25, 1  ;;  %s731_s9 = smov [#allocation6]  }
 0x2fc   : > { %s532_s10 = sshll.u32 %s731_s9, 4  ;;  %s534_s13 = sshll.u32 %s847_s6, 4  ;;  %s533_s10 = int_to_ptr.vmem [resolvable:$true] %s532_s10  ;;  %s535_s13 = int_to_ptr.hbm [resolvable:$true] %s534_s13 }
 0x2fd   : > { %617 = dma.vmem_to_hbm [thread:$0]  (%p626_p9), %s533_s10, 32, %s535_s13, [#allocation5]  }
 0x2fe   : > { %720 = dma.done.wait (%p626_p9), [#allocation5], 32  }
 0x2ff   : > { %722 = vsyncadd (%p626_p9), [#allocation5], 4294967264 }
 0x300 PF: > { %s18_s21 = sadd.s32 1, %s725_s21  }
 0x301   : > { %p15_p10 = scmp.ge.s32.totalorder %s18_s21, 4  }
 0x303   :  { %17 = sbr.rel (!%p15_p10) target bundleno = 2 (0x2), region = 87 }
 0x308   :  { %548 = vsyncpa [#allocation4], 1 }
 0x309   :  { %550 = vsyncpa [#allocation4 + $0x1], 1 }
 0x30a   :  { %551 = vsyncpa [#allocation5], 1 }
 0x30b   :  { %553 = vsyncpa [#allocation5 + $0x1], 1 }

</bundles_post_ra>
